<compile_context>
chip_gen: v5e
topology: v5e:2x2
jax: 0.10.0
libtpu: 0.0.40
codegen_flags: <defaults>
</compile_context>

<pallas_src>
import jax
import jax.numpy as jnp
from jax.experimental import pallas as pl
from jax.experimental.pallas import tpu as pltpu

_LANES = 128


def _binary_classifier_kernel(w_ref, b_ref, x_ref, o_ref):
    # w_ref: SMEM (F,)   b_ref: SMEM (1,)
    # x_ref: VMEM (F, TR, 128)   o_ref: VMEM (TR, 128)
    F = x_ref.shape[0]
    # Linear(F, 1) on the VPU (static Python loop, F == 2), bias folded into
    # the first FMA.  All math in f32.
    acc = x_ref[0] * w_ref[0] + b_ref[0]
    for f in range(1, F):
        acc = acc + x_ref[f] * w_ref[f]
    # Sigmoid goes to the EUP; dense (TR, 128) store.
    o_ref[...] = jax.nn.sigmoid(acc).astype(o_ref.dtype)


def binary_classifier_forward(x, weight, bias, *, block_rows=256):
    """sigmoid(x @ weight.T + bias), matching torch.nn.Linear(2, 1) + Sigmoid.

    x: (B, F) float; weight: (1, F); bias: (1,). Returns (B, 1) float32.
    """
    B, F = x.shape
    assert weight.shape == (1, F) and bias.shape == (1,)

    x = x.astype(jnp.float32)
    w = weight.reshape(F).astype(jnp.float32)   # scalar weights -> SMEM
    b = bias.reshape(1).astype(jnp.float32)     # scalar bias    -> SMEM

    # Batch onto (sublane, lane): rows of 128 batch elements.
    rows_total = pl.cdiv(B, _LANES)
    if rows_total <= block_rows:
        tr, n_tiles = rows_total, 1             # single full-extent block
    else:
        tr = block_rows                         # multiple of 8 -> dense tiles
        n_tiles = pl.cdiv(rows_total, tr)
    rows_p = n_tiles * tr
    Bp = rows_p * _LANES

    xT = x.T                                    # (F, B), feature-major
    if Bp != B:
        xT = jnp.pad(xT, ((0, 0), (0, Bp - B)))
    x3 = xT.reshape(F, rows_p, _LANES)          # batch b -> (b // 128, b % 128)

    out = pl.pallas_call(
        _binary_classifier_kernel,
        out_shape=jax.ShapeDtypeStruct((rows_p, _LANES), jnp.float32),
        grid=(n_tiles,),
        in_specs=[
            pl.BlockSpec(memory_space=pltpu.MemorySpace.SMEM),     # weights
            pl.BlockSpec(memory_space=pltpu.MemorySpace.SMEM),     # bias
            pl.BlockSpec((F, tr, _LANES), lambda i: (0, i, 0)),    # activations
        ],
        out_specs=pl.BlockSpec((tr, _LANES), lambda i: (i, 0)),    # dense output
        compiler_params=pltpu.CompilerParams(
            dimension_semantics=("parallel",)),                    # megacore
    )(w, b, x3)

    # Back to PyTorch's (B, 1) layout (cheap XLA reshape/slice outside kernel).
    return out.reshape(Bp)[:B].reshape(B, 1)


if __name__ == "__main__":
    key = jax.random.PRNGKey(0)
    k_x, k_w, k_b, k_x2 = jax.random.split(key, 4)

    B, F, OUT = 8, 2, 1  # nn.Linear(2, 1)

    # Deterministic init mimicking PyTorch's default: U(-1/sqrt(fan_in), ...)
    bound = 1.0 / (F ** 0.5)
    weight = jax.random.uniform(k_w, (OUT, F), jnp.float32, -bound, bound)
    bias = jax.random.uniform(k_b, (OUT,), jnp.float32, -bound, bound)

    # Small-batch path (single full-extent block).
    x = jax.random.normal(k_x, (B, F), jnp.float32)
    out = jax.block_until_ready(binary_classifier_forward(x, weight, bias))
    ref = jax.nn.sigmoid(x @ weight.T + bias)
    assert out.shape == (B, OUT)
    assert jnp.allclose(out, ref, atol=1e-5, rtol=1e-5)

    # Larger ragged batch: exercises tiling + padding + the parallel grid axis.
    B2 = 2053
    x2 = jax.random.normal(k_x2, (B2, F), jnp.float32)
    out2 = jax.block_until_ready(
        binary_classifier_forward(x2, weight, bias, block_rows=8))
    ref2 = jax.nn.sigmoid(x2 @ weight.T + bias)
    assert out2.shape == (B2, OUT)
    assert jnp.allclose(out2, ref2, atol=1e-5, rtol=1e-5)

    print("KERNEL_OK")
</pallas_src>

<mosaic_0001>
module attributes {stable_mosaic.version = 11 : i64} {
  func.func @_binary_classifier_kernel(%arg0: i32, %arg1: memref<2xf32, #tpu.memory_space<smem>>, %arg2: memref<1xf32, #tpu.memory_space<smem>>, %arg3: memref<2x1x128xf32, #tpu.memory_space<vmem>>, %arg4: memref<1x128xf32, #tpu.memory_space<vmem>>) attributes {dimension_semantics = [#tpu.dimension_semantics<parallel>], iteration_bounds = array<i64: 1>, scalar_prefetch = 0 : i64, scratch_operands = 0 : i64, tpu.core_type = #tpu.core_type<tc>, window_params = [{transform_indices = @transform_0, window_bounds = array<i64: 2>}, {transform_indices = @transform_1, window_bounds = array<i64: 1>}, {transform_indices = @transform_2, window_bounds = array<i64: 2, 1, 128>}, {transform_indices = @transform_3, window_bounds = array<i64: 1, 128>}]} {
    %c0 = arith.constant 0 : index
    %c0_0 = arith.constant 0 : index
    %c0_1 = arith.constant 0 : index
    %0 = vector.load %arg3[%c0, %c0_0, %c0_1] : memref<2x1x128xf32, #tpu.memory_space<vmem>>, vector<1x1x128xf32>
    %1 = vector.shape_cast %0 : vector<1x1x128xf32> to vector<1x128xf32>
    %c0_2 = arith.constant 0 : index
    %2 = memref.load %arg1[%c0_2] : memref<2xf32, #tpu.memory_space<smem>>
    %3 = vector.broadcast %2 : f32 to vector<1x128xf32>
    %4 = arith.mulf %1, %3 : vector<1x128xf32>
    %c0_3 = arith.constant 0 : index
    %5 = memref.load %arg2[%c0_3] : memref<1xf32, #tpu.memory_space<smem>>
    %6 = vector.broadcast %5 : f32 to vector<1x128xf32>
    %7 = arith.addf %4, %6 : vector<1x128xf32>
    %c1 = arith.constant 1 : index
    %c0_4 = arith.constant 0 : index
    %c0_5 = arith.constant 0 : index
    %8 = vector.load %arg3[%c1, %c0_4, %c0_5] : memref<2x1x128xf32, #tpu.memory_space<vmem>>, vector<1x1x128xf32>
    %9 = vector.shape_cast %8 : vector<1x1x128xf32> to vector<1x128xf32>
    %c1_6 = arith.constant 1 : index
    %10 = memref.load %arg1[%c1_6] : memref<2xf32, #tpu.memory_space<smem>>
    %11 = vector.broadcast %10 : f32 to vector<1x128xf32>
    %12 = arith.mulf %9, %11 : vector<1x128xf32>
    %13 = arith.addf %7, %12 : vector<1x128xf32>
    %14 = arith.negf %13 : vector<1x128xf32>
    %15 = math.exp %14 : vector<1x128xf32>
    %cst = arith.constant 1.000000e+00 : f32
    %16 = vector.broadcast %cst : f32 to vector<1x128xf32>
    %17 = arith.addf %16, %15 : vector<1x128xf32>
    %18 = arith.divf %16, %17 : vector<1x128xf32>
    %c0_7 = arith.constant 0 : index
    %c0_8 = arith.constant 0 : index
    %19 = vector.load %arg4[%c0_7, %c0_8] : memref<1x128xf32, #tpu.memory_space<vmem>>, vector<1x128xf32>
    tpu.vector_store %arg4[%c0_7, %c0_8], %18 {strides = array<i32>} : memref<1x128xf32, #tpu.memory_space<vmem>>, vector<1x128xf32>,
    return
  }
  func.func @transform_0(%arg0: i32) -> i32 {
    %c0_i32 = arith.constant 0 : i32
    %c0_i32_0 = arith.constant 0 : i32
    return %c0_i32 : i32
  }
  func.func @transform_1(%arg0: i32) -> i32 {
    %c0_i32 = arith.constant 0 : i32
    %c0_i32_0 = arith.constant 0 : i32
    return %c0_i32 : i32
  }
  func.func @transform_2(%arg0: i32) -> (i32, i32, i32) {
    %c0_i32 = arith.constant 0 : i32
    %c0_i32_0 = arith.constant 0 : i32
    %c0_i32_1 = arith.constant 0 : i32
    return %c0_i32, %arg0, %c0_i32_0 : i32, i32, i32
  }
  func.func @transform_3(%arg0: i32) -> (i32, i32) {
    %c0_i32 = arith.constant 0 : i32
    %c0_i32_0 = arith.constant 0 : i32
    return %arg0, %c0_i32 : i32, i32
  }
}

</mosaic_0001>

<bundles_post_ra>
// kernel: tpu_custom_call.1
= control target key start
LH: loop header
LB: loop body
LE: loop exit
PB: predicated region body
PF: predicated region fallthrough
CT: control target
= control target key end

     0   :  { %9 = vsyncpa [#allocation5], 0  ;;  %s165_s0 = inlined_call_operand.hbm [shape: f32[2], index: 0, kind: input, shape index: {}]   ;;  %s166_s1 = inlined_call_operand.<no memory space> [shape: f32[1], index: 1, kind: input, shape index: {}]   ;;  %s167_s2 = inlined_call_operand.vmem [shape: f32[2,1,128], index: 2, kind: input, shape index: {}]   ;;  %s168_s3 = inlined_call_operand.hbm [shape: f32[1,128], index: 3, kind: output, shape index: {}]  }
   0x1   :  { %10 = vsyncpa [#allocation4], 0  ;;  %s16_s14 = sshll.u32 %s165_s0, 4  ;;  %s128_s15 = smov [#allocation3]   ;;  %s17_s14 = int_to_ptr.hbm [resolvable:$true] %s16_s14 }
   0x2   :  { %19 = dma.hbm_to_smem %s17_s14, 16, %s128_s15, [#allocation5]  }
   0x3   :  { %124 = dma.done.wait [#allocation5], 16  }
   0x4   :  { %125 = vsyncadd [#allocation5], 4294967280 }
   0x5   :  { %28 = sfence }
   0x6   :  { %s30_s16 = sld [smem:[#allocation3]]  ;;  %v29_v0 = vld [vmem:[%s167_s2] sm:$0x1]  ;;  %v79_v1 = vld [vmem:[%s167_s2 + $0x1] sm:$0x1]  ;;  %v34_v3 = vstv %s166_s1  ;;  %s129_s0 = smov [#allocation6]  }
   0x7   :  { %s80_s17 = sld [smem:[#allocation3 + $0x1]]  ;;  %s67_s1 = sshll.u32 %s129_s0, 4  ;;  %s68_s1 = int_to_ptr.vmem [resolvable:$true] %s67_s1 }
   0x8   :  { %s69_s25 = sshll.u32 %s168_s3, 4  ;;  %s70_s25 = int_to_ptr.hbm [resolvable:$true] %s69_s25 }
   0xc   :  { %v31_v2 = vstv %s30_s16 }
   0xd   :  { %v32_v4 = vmul.f32 %v31_v2, %v29_v0  ;;  %v39_v5 = vstv %s80_s17 }
   0xe   :  { %v40_v6 = vmul.f32 %v79_v1, %v39_v5 }
   0xf   :  { %v35_v7 = vadd.f32 %v34_v3, %v32_v4 }
  0x11   :  { %v41_v8 = vadd.f32 %v40_v6, %v35_v7 }
  0x13   :  { %v81_v9 = vmul.f32 -1.442695, %v41_v8 }
  0x15   :  { %84 = vpow2.f32 %v81_v9 }
  0x1b   :  { %v85_v10 = vpop.eup %84 }
  0x1c   :  { %v45_v11 = vadd.f32 1.0, %v85_v10 }
  0x1e   :  { %86 = vrcp.f32 %v45_v11  ;;  %v57_v14 = vand.u32 2147483648, %v45_v11  ;;  %vm51_vm0 = vweird.f32 %v45_v11  ;;  %v55_v16 = vand.u32 2147483647, %v45_v11 }
  0x20   :  { %v58_v18 = vor.u32 1.1754944e-38, %v57_v14  ;;  %vm56_vm3 = vcmp.eq.f32.partialorder %v55_v16, 8.507059e+37 }
  0x24   :  { %v87_v12 = vpop.eup %86 }
  0x25   :  { %v47_v13 = vmul.f32 %v87_v12, %v45_v11  ;;  %vm52_vm1 = vweird.f32 %v87_v12 }
  0x26   :  { %vm53_vm2 = vmor %vm51_vm0, %vm52_vm1 }
  0x27   :  { %v48_v15 = vsub.f32 1.0, %v47_v13 }
  0x29   :  { %v49_v17 = vmul.f32 %v87_v12, %v48_v15 }
  0x2b   :  { %v50_v19 = vadd.f32 %v87_v12, %v49_v17 }
  0x2d   :  { %v54_v20 = vsel %vm53_vm2, %v87_v12, %v50_v19 }
  0x2e   :  { %v59_v21 = vsel %vm56_vm3, %v58_v18, %v54_v20 }
  0x2f   :  { %61 = vst [vmem:[#allocation6] sm:$0x1] %v59_v21 }
  0x30   :  { %72 = dma.vmem_to_hbm [thread:$0]  %s68_s1, 16, %s70_s25, [#allocation4]  }
  0x31   :  { %126 = dma.done.wait [#allocation4], 16  }
  0x32   :  { %127 = vsyncadd [#allocation4], 4294967280 }
  0x33   :  { %77 = vsyncpa [#allocation4], 1 }
  0x34   :  { %78 = vsyncpa [#allocation5], 1 }

</bundles_post_ra>
